<compile_context>
chip_gen: v7x
topology: tpu7x:2x2x1
jax: 0.10.0
libtpu: 0.0.40
codegen_flags: <defaults>
</compile_context>

<pallas_src>
import math
import functools

import jax
import jax.numpy as jnp
from jax.experimental import pallas as pl
from jax.experimental.pallas import tpu as pltpu


def _softmax_attention(q, k, v, *, inv_scale):
    """q:(B,Lq,Dk) k:(B,Lk,Dk) v:(B,Lk,Dv) -> (p, out) with out=(B,Lq,Dv), all f32."""
    qs = q * inv_scale                                            # fold 1/scale into q
    # Batched contraction on last dims -- no explicit .T / XLU transpose in-kernel.
    qk = jnp.einsum("bqd,bkd->bqk", qs, k,
                    preferred_element_type=jnp.float32)           # (B, Lq, Lk)
    m = jnp.max(qk, axis=-1, keepdims=True)
    e = jnp.exp(qk - m)
    p = e * pl.reciprocal(jnp.sum(e, axis=-1, keepdims=True), approx=False)
    return p


def sdpa_eval_kernel(q_ref, k_ref, v_ref, o_ref, *, inv_scale):
    """Eval mode (dropout == identity, like module.eval()). One step for all batches."""
    q = q_ref[...].astype(jnp.float32)
    k = k_ref[...].astype(jnp.float32)
    v = v_ref[...].astype(jnp.float32)
    p = _softmax_attention(q, k, v, inv_scale=inv_scale)
    o = jnp.einsum("bqk,bkv->bqv", p, v, preferred_element_type=jnp.float32)
    o_ref[...] = o.astype(o_ref.dtype)


def sdpa_train_kernel(seed_ref, q_ref, k_ref, v_ref, o_ref, *, inv_scale, dropout_p):
    """Training mode: in-kernel PRNG dropout (not bit-identical to torch dropout)."""
    q = q_ref[...].astype(jnp.float32)
    k = k_ref[...].astype(jnp.float32)
    v = v_ref[...].astype(jnp.float32)
    p = _softmax_attention(q, k, v, inv_scale=inv_scale)

    # Integer-domain uniform threshold test: keep iff u32 >= p * 2^32.
    pltpu.prng_seed(seed_ref[0])
    bits = pltpu.bitcast(pltpu.prng_random_bits(p.shape), jnp.uint32)
    threshold = jnp.uint32(min(int(dropout_p * (1 << 32)), (1 << 32) - 1))
    keep = bits >= threshold
    p = jnp.where(keep, p * (1.0 / (1.0 - dropout_p)), 0.0)

    o = jnp.einsum("bqk,bkv->bqv", p.astype(jnp.float32), v,
                   preferred_element_type=jnp.float32)
    o_ref[...] = o.astype(o_ref.dtype)


def _full_spec(shape):
    # Full-array VMEM block for a grid-less (single invocation) pallas_call.
    return pl.BlockSpec(shape, lambda: (0,) * len(shape))


def my_model_forward(query, key, value, *, dropout_p=0.1, training=False, seed=0):
    B, Lq, Dk = query.shape
    Bk, Lk, Dk2 = key.shape
    Bv, Lk2, Dv = value.shape
    assert B == Bk == Bv and Dk == Dk2 and Lk == Lk2, "inconsistent attention shapes"

    inv_scale = 1.0 / math.sqrt(key.shape[-1])   # scale_factor = sqrt(key.size(-1))
    out_shape = jax.ShapeDtypeStruct((B, Lq, Dv), jnp.float32)

    if training and dropout_p > 0.0:
        kernel = functools.partial(sdpa_train_kernel,
                                   inv_scale=inv_scale, dropout_p=dropout_p)
        seed_arr = jnp.array([seed], dtype=jnp.int32)
        return pl.pallas_call(
            kernel,
            out_shape=out_shape,
            in_specs=[pl.BlockSpec(memory_space=pltpu.MemorySpace.SMEM),  # seed scalar
                      _full_spec((B, Lq, Dk)),
                      _full_spec((B, Lk, Dk)),
                      _full_spec((B, Lk, Dv))],
            out_specs=_full_spec((B, Lq, Dv)),
        )(seed_arr, query, key, value)

    # Eval mode: no seed argument at all.
    kernel = functools.partial(sdpa_eval_kernel, inv_scale=inv_scale)
    return pl.pallas_call(
        kernel,
        out_shape=out_shape,
        in_specs=[_full_spec((B, Lq, Dk)),
                  _full_spec((B, Lk, Dk)),
                  _full_spec((B, Lk, Dv))],
        out_specs=_full_spec((B, Lq, Dv)),
    )(query, key, value)


def _reference(query, key, value):
    scale = math.sqrt(key.shape[-1])
    qk = jnp.einsum("bqd,bkd->bqk", query, key) / scale
    p = jax.nn.softmax(qk, axis=-1)
    return jnp.einsum("bqk,bkv->bqv", p, value)


if __name__ == "__main__":
    rng = jax.random.PRNGKey(0)
    kq, kk, kv = jax.random.split(rng, 3)

    B, Lq, Lk, Dk, Dv = 3, 2, 6, 5, 7
    query = jax.random.normal(kq, (B, Lq, Dk), dtype=jnp.float32)
    key   = jax.random.normal(kk, (B, Lk, Dk), dtype=jnp.float32)
    value = jax.random.normal(kv, (B, Lk, Dv), dtype=jnp.float32)

    # Eval-mode forward (dropout is identity, matching torch module.eval()).
    # training=True enables in-kernel PRNG dropout (intentionally not bit-identical
    # to torch.nn.functional.dropout).
    out = my_model_forward(query, key, value, dropout_p=0.1, training=False)
    out = jax.block_until_ready(out)

    ref = _reference(query, key, value)
    assert out.shape == (B, Lq, Dv)
    assert jnp.allclose(out, ref, atol=1e-5, rtol=1e-5), "mismatch vs JAX reference"

    print("KERNEL_OK")
</pallas_src>

<mosaic_0001>
module attributes {stable_mosaic.version = 11 : i64} {
  func.func @sdpa_eval_kernel(%arg0: memref<3x2x5xf32, #tpu.memory_space<vmem>>, %arg1: memref<3x6x5xf32, #tpu.memory_space<vmem>>, %arg2: memref<3x6x7xf32, #tpu.memory_space<vmem>>, %arg3: memref<3x2x7xf32, #tpu.memory_space<vmem>>) attributes {dimension_semantics = [], scalar_prefetch = 0 : i64, scratch_operands = 0 : i64, tpu.core_type = #tpu.core_type<tc>} {
    %c0 = arith.constant 0 : index
    %c0_0 = arith.constant 0 : index
    %c0_1 = arith.constant 0 : index
    %0 = vector.load %arg0[%c0, %c0_0, %c0_1] : memref<3x2x5xf32, #tpu.memory_space<vmem>>, vector<3x2x5xf32>
    %c0_2 = arith.constant 0 : index
    %c0_3 = arith.constant 0 : index
    %c0_4 = arith.constant 0 : index
    %1 = vector.load %arg1[%c0_2, %c0_3, %c0_4] : memref<3x6x5xf32, #tpu.memory_space<vmem>>, vector<3x6x5xf32>
    %c0_5 = arith.constant 0 : index
    %c0_6 = arith.constant 0 : index
    %c0_7 = arith.constant 0 : index
    %2 = vector.load %arg2[%c0_5, %c0_6, %c0_7] : memref<3x6x7xf32, #tpu.memory_space<vmem>>, vector<3x6x7xf32>
    %cst = arith.constant 0.44721359 : f32
    %3 = vector.broadcast %cst : f32 to vector<3x2x5xf32>
    %4 = arith.mulf %0, %3 : vector<3x2x5xf32>
    "tpu.trace_start"() <{level = 10 : i32, message = "bqd,bkd->bqk"}> : () -> ()
    %cst_8 = arith.constant dense<0.000000e+00> : vector<3x2x6xf32>
    %5 = tpu.matmul %4, %1, %cst_8 {dimension_numbers = #tpu.dot_dimension_numbers<[2], [2], [1], [1], [0, 0, 0, 1, 1, 1], [0], [0]>} : vector<3x2x5xf32>, vector<3x6x5xf32>, vector<3x2x6xf32> -> vector<3x2x6xf32>
    "tpu.trace_stop"() : () -> ()
    %cst_9 = arith.constant dense<0xFF800000> : vector<3x2xf32>
    %6 = vector.multi_reduction <maximumf>, %5, %cst_9 [2] : vector<3x2x6xf32> to vector<3x2xf32>
    %7 = vector.shape_cast %6 : vector<3x2xf32> to vector<3x2x1xf32>
    %8 = vector.broadcast %7 : vector<3x2x1xf32> to vector<3x2x6xf32>
    %9 = arith.subf %5, %8 : vector<3x2x6xf32>
    %10 = math.exp %9 : vector<3x2x6xf32>
    %cst_10 = arith.constant dense<0.000000e+00> : vector<3x2xf32>
    %11 = vector.multi_reduction <add>, %10, %cst_10 [2] : vector<3x2x6xf32> to vector<3x2xf32>
    %12 = vector.shape_cast %11 : vector<3x2xf32> to vector<3x2x1xf32>
    %13 = tpu.reciprocal %12 : vector<3x2x1xf32> -> vector<3x2x1xf32>
    %14 = vector.broadcast %13 : vector<3x2x1xf32> to vector<3x2x6xf32>
    %15 = arith.mulf %10, %14 : vector<3x2x6xf32>
    "tpu.trace_start"() <{level = 10 : i32, message = "bqk,bkv->bqv"}> : () -> ()
    %cst_11 = arith.constant dense<0.000000e+00> : vector<3x2x7xf32>
    %16 = tpu.matmul %15, %2, %cst_11 {dimension_numbers = #tpu.dot_dimension_numbers<[2], [1], [1], [2], [0, 0, 0, 1, 1, 2], [0], [0]>} : vector<3x2x6xf32>, vector<3x6x7xf32>, vector<3x2x7xf32> -> vector<3x2x7xf32>
    "tpu.trace_stop"() : () -> ()
    %c0_12 = arith.constant 0 : index
    %c0_13 = arith.constant 0 : index
    %c0_14 = arith.constant 0 : index
    %17 = vector.load %arg3[%c0_12, %c0_13, %c0_14] : memref<3x2x7xf32, #tpu.memory_space<vmem>>, vector<3x2x7xf32>
    tpu.vector_store %arg3[%c0_12, %c0_13, %c0_14], %16 {strides = array<i32>} : memref<3x2x7xf32, #tpu.memory_space<vmem>>, vector<3x2x7xf32>,
    return
  }
}

</mosaic_0001>

<bundles_post_ra>
// kernel: tpu_custom_call.1
= control target key start
LH: loop header
LB: loop body
LE: loop exit
PB: predicated region body
PF: predicated region fallthrough
CT: control target
= control target key end

     0   :  { %vm27_vm0 = vcmask 39936   ;;  %v635_v1 = vmov 0.0   ;;  %vm636_vm1 = vmmov 0   ;;  %s732_s0 = inlined_call_operand.vmem [shape: f32[3,2,5], index: 0, kind: input, shape index: {}]   ;;  %s733_s1 = inlined_call_operand.vmem [shape: f32[3,6,5], index: 1, kind: input, shape index: {}]   ;;  %s734_s2 = inlined_call_operand.vmem [shape: f32[3,6,7], index: 2, kind: input, shape index: {}]   ;;  %s735_s3 = inlined_call_operand.hbm [shape: f32[3,2,7], index: 3, kind: output, shape index: {}]  }
   0x1   :  { %v18_v0 = vld [vmem:[%s733_s1] sm:$0x3f]  ;;  %564 = vmatprep.subr.mxu0 %v635_v1  ;;  %566 = vmatprep.mubr.msk.f32.mxu0 %vm636_vm1, %v635_v1  ;;  %v19_v3 = vld [vmem:[%s733_s1 + $0x8] sm:$0x3f]  ;;  %v20_v7 = vld [vmem:[%s733_s1 + $0x10] sm:$0x3f] }
   0x2   :  { %v15_v2 = vld [vmem:[%s732_s0] sm:$0x3]  ;;  %565 = vmatpush3.xpose.msk.msra.mxu0 %vm27_vm0, %v18_v0  ;;  %569 = vmatprep.subr.mxu1 %v635_v1  ;;  %v16_v5 = vld [vmem:[%s732_s0 + $0x2] sm:$0x3]  ;;  %v17_v6 = vld [vmem:[%s732_s0 + $0x4] sm:$0x3] }
   0x3   :  { %v24_v4 = vmul.f32 0.4472136, %v15_v2  ;;  %574 = vmatprep.subr.mxu0 %v635_v1  ;;  %570 = vmatpush3.xpose.msk.msra.mxu1 %vm27_vm0, %v19_v3  ;;  %v25_v8 = vmul.f32 0.4472136, %v16_v5 }
   0x4   :  { %8 = vsyncpa [#allocation3], 0  ;;  %571 = vmatprep.mubr.msk.f32.mxu1 %vm636_vm1, %v635_v1  ;;  %579 = vmatprep.subr.mxu1 %v635_v1  ;;  %v26_v9 = vmul.f32 0.4472136, %v17_v6  ;;  %vm256_vm2 = vcmask 41984   ;;  %vm294_vm3 = vcmask 1045504  }
   0x5   :  { %567 = vmatmul.mubr.msk.f32.vlgmr.msra.gmra.mrb[0].mxu0 %vm27_vm0, %v24_v4  ;;  %v21_v34 = vld [vmem:[%s734_s2] sm:$0x3f]  ;;  %v22_v35 = vld [vmem:[%s734_s2 + $0x8] sm:$0x3f]  ;;  %vm290_vm4 = vcmask 48128   ;;  %vm520_vm5 = vcmask 50176  }
   0x6   :  { %575 = vmatpush3.xpose.msk.msra.mxu0 %vm27_vm0, %v20_v7  ;;  %576 = vmatprep.mubr.msk.f32.mxu0 %vm636_vm1, %v635_v1  ;;  %v23_v41 = vld [vmem:[%s734_s2 + $0x10] sm:$0x3f]  ;;  %s637_s28 = smov [#allocation2]  }
   0x7   :  { %572 = vmatmul.mubr.msk.f32.vlgmr.msra.gmra.mrb[0].mxu1 %vm27_vm0, %v25_v8  ;;  %584 = vmatprep.subr.mxu0 %v635_v1  ;;  %s529_s29 = sshll.u32 %s637_s28, 4  ;;  %s530_s29 = int_to_ptr.vmem [resolvable:$true] %s529_s29 }
   0x8   :  { %581 = vmatprep.mubr.msk.f32.mxu1 %vm636_vm1, %v635_v1  ;;  %580 = vmatpush3.msk.msra.mxu1 %vm294_vm3, %v21_v34  ;;  %s611_s2 = scalar_lea.vmem %s530_s29, 96  ;;  %p616_p1 = scmp.lt.s32.totalorder %s530_s29, %s530_s29 }
   0x9   :  { %577 = vmatmul.mubr.msk.f32.vlgmr.msra.gmra.mrb[2].mxu0 %vm27_vm0, %v26_v9  ;;  %589 = vmatprep.subr.mxu1 %v635_v1  ;;  %p612_p0 = scmp.ne.s32.totalorder %s530_s29, %s611_s2  ;;  %p617_p2 = scmp.lt.s32.totalorder %s611_s2, %s611_s2 }
   0xa   :  { %586 = vmatprep.mubr.msk.f32.mxu0 %vm636_vm1, %v635_v1  ;;  %585 = vmatpush3.msk.msra.mxu0 %vm294_vm3, %v22_v35 }
   0xb   :  { %p618_p3 = por %p617_p2, %p616_p1 }
   0xd   :  { %p619_p4 = pnand %p618_p3, %p612_p0 }
  0xd8   :  { %v100_v10 = vpop.f32.mrb[0].mxu0 }
  0xd9   :  { %v568_v11 = vpop.f32.mrb[1].mxu0  ;;  %v257_v12 = vsel %vm256_vm2, %v100_v10, -inf }
  0xda   :  { %258 = vmax.xlane.f32.xlu0 %v257_v12  ;;  %v176_v13 = vpop.f32.mrb[0].mxu1 }
  0xdb   :  { %v573_v14 = vpop.f32.mrb[1].mxu1  ;;  %v260_v15 = vsel %vm256_vm2, %v176_v13, -inf }
  0xdc   :  { %v252_v16 = vpop.f32.mrb[2].mxu0 }
  0xdd   :  { %v578_v17 = vpop.f32.mrb[3].mxu0  ;;  %v263_v18 = vsel %vm256_vm2, %v252_v16, -inf }
  0xde   :  { %261 = vmax.xlane.f32.xlu0 %v260_v15  ;;  %264 = vmax.xlane.f32.xlu1 %v263_v18 }
 0x167   :  { %v259_v19 = vpop.xlane.xlu0 %258 }
 0x168   :  { %v266_v20 = vsub.f32 %v100_v10, %v259_v19 }
 0x16a   :  { %v269_v21 = vmul.f32 1.442695, %v266_v20 }
 0x16b   :  { %v262_v22 = vpop.xlane.xlu0 %261  ;;  %v265_v23 = vpop.xlane.xlu1 %264 }
 0x16c   :  { %599 = vpow2.f32 %v269_v21  ;;  %v267_v24 = vsub.f32 %v176_v13, %v262_v22  ;;  %v268_v25 = vsub.f32 %v252_v16, %v265_v23 }
 0x16e   :  { %v271_v26 = vmul.f32 1.442695, %v267_v24  ;;  %v273_v27 = vmul.f32 1.442695, %v268_v25 }
 0x170   :  { %601 = vpow2.f32 %v271_v26 }
 0x171   :  { %603 = vpow2.f32 %v273_v27 }
 0x176   :  { %v600_v28 = vpop.eup %599 }
 0x177   :  { %v275_v29 = vsel %vm256_vm2, %v600_v28, 0.0 }
 0x178   :  { %276 = vadd.xlane.f32.xlu1 %v275_v29 }
 0x17a   :  { %v602_v30 = vpop.eup %601 }
 0x17b   :  { %v604_v31 = vpop.eup %603  ;;  %v278_v32 = vsel %vm256_vm2, %v602_v30, 0.0 }
 0x17c   :  { %279 = vadd.xlane.f32.xlu0 %v278_v32  ;;  %v281_v33 = vsel %vm256_vm2, %v604_v31, 0.0 }
 0x17d   :  { %282 = vadd.xlane.f32.xlu1 %v281_v33 }
 0x205   :  { %v277_v36 = vpop.xlane.xlu1 %276 }
 0x206   :  { %605 = vrcp.f32 %v277_v36 }
 0x209   :  { %v280_v37 = vpop.xlane.xlu0 %279 }
 0x20a   :  { %607 = vrcp.f32 %v280_v37  ;;  %v283_v38 = vpop.xlane.xlu1 %282 }
 0x20b   :  { %609 = vrcp.f32 %v283_v38 }
 0x210   :  { %v606_v39 = vpop.eup %605 }
 0x211   :  { %v287_v40 = vmul.f32 %v606_v39, %v600_v28 }
 0x213   :  { %582 = vmatmul.mubr.msk.f32.vlgmr.msra.gmra.mrb[2].mxu1 %vm290_vm4, %v287_v40 }
 0x214   :  { %v608_v42 = vpop.eup %607  ;;  %590 = vmatpush3.msk.msra.mxu1 %vm294_vm3, %v23_v41  ;;  %591 = vmatprep.mubr.msk.f32.mxu1 %vm636_vm1, %v635_v1 }
 0x215   :  { %v610_v43 = vpop.eup %609  ;;  %v288_v44 = vmul.f32 %v608_v42, %v602_v30 }
 0x216   :  { %v289_v45 = vmul.f32 %v610_v43, %v604_v31 }
 0x217   :  { %587 = vmatmul.mubr.msk.f32.vlgmr.msra.gmra.mrb[4].mxu0 %vm290_vm4, %v288_v44 }
 0x218   :  { %592 = vmatmul.mubr.msk.f32.vlgmr.msra.gmra.mrb[4].mxu1 %vm290_vm4, %v289_v45 }
 0x2e6   :  { %v364_v46 = vpop.f32.mrb[2].mxu1 }
 0x2e7   :  { %521 = vst.msk [vmem:[#allocation2] sm:$0x3] %vm520_vm5, %v364_v46  ;;  %v583_v47 = vpop.f32.mrb[3].mxu1 }
 0x2ea   :  { %v440_v48 = vpop.f32.mrb[4].mxu0 }
 0x2eb   :  { %522 = vst.msk [vmem:[#allocation2 + $0x2] sm:$0x3] %vm520_vm5, %v440_v48  ;;  %v516_v49 = vpop.f32.mrb[4].mxu1  ;;  %v588_v50 = vpop.f32.mrb[5].mxu0 }
 0x2ec   :  { %523 = vst.msk [vmem:[#allocation2 + $0x4] sm:$0x3] %vm520_vm5, %v516_v49  ;;  %v593_v51 = vpop.f32.mrb[5].mxu1 }
 0x2ed   :  { %622 = shalt.err (!%p619_p4)
}
 0x2ee   :  { %s623_s5 = scalar_lea.hbm %s735_s3, 96 }
 0x2ef   :  { %p624_p5 = scmp.ne.s32.totalorder %s735_s3, %s623_s5  ;;  %p627_p6 = scmp.lt.u32.totalorder %s623_s5, %s735_s3 }
 0x2f1   :  { %p629_p7 = pnand %p627_p6, %p624_p5 }
 0x2f3   :  { %632 = shalt.err (!%p629_p7)
}
 0x2f4   :  { %s638_s10 = smov 32   ;;  %s639_s11 = smov 2  }
 0x2f5   :  { %535 = dma.vmem_to_hbm [thread:$0]  %s530_s29, 96, %s735_s3, [#allocation3], %s638_s10, %s638_s10, %s639_s11  }
 0x2f6   :  { %633 = dma.done.wait [#allocation3], 96  }
 0x2f7   :  { %634 = vsyncadd [#allocation3], 4294967200 }
 0x2f8   :  { %539 = vsyncpa [#allocation3], 1 }

</bundles_post_ra>
